<compile_context>
chip_gen: v7x
topology: tpu7x:2x2x1
jax: 0.10.0
libtpu: 0.0.40
codegen_flags: <defaults>
</compile_context>

<pallas_src>
from functools import partial

import jax
import jax.numpy as jnp
from jax.experimental import pallas as pl
from jax.experimental.pallas import tpu as pltpu


def _noise_reverb_kernel(fp_ref, ip_ref, w_ref, halo_ref, noise_ref, x_ref,
                         out_ref, *, tm, blk):
    """One grid step = one (tm, blk) tile of samples.

    fp_ref:   SMEM (6,)  f32   [blend_ir, 1-blend_ir, sustain*blend_out,
                                1-blend_out, 1/attack, 1/release]
    ip_ref:   SMEM (1,)  i32   [n - 1]
    w_ref:    VMEM (2*blk, blk) bf16  stacked Toeplitz FIR bands [t_prev; t_cur]
    halo_ref: VMEM (1, 1, blk)  last noise row of the previous tile (zeros for
                                the first tile)
    noise_ref/x_ref/out_ref: VMEM (tm, blk) f32
    """
    noise = noise_ref[...]                     # (tm, blk) f32
    x = x_ref[...]

    # --- scalars hoisted once per tile --------------------------------------
    b_ir = fp_ref[0]
    one_m_b_ir = fp_ref[1]
    sus_b_out = fp_ref[2]                      # sustain * blend_out folded
    one_m_b_out = fp_ref[3]
    inv_attack = fp_ref[4]
    inv_release = fp_ref[5]
    n_minus_1 = ip_ref[0]                      # int32 -> exact position math

    # --- causal FIR on the MXU ----------------------------------------------
    # prev[m] = noise[m-1]; prev[0] = halo (last noise row of previous tile).
    # Assemble the fused K=2*blk LHS [prev | noise] in bf16 and do ONE matmul
    # against the resident stacked Toeplitz weight tile (f32 accumulation).
    # NOTE: pltpu.roll(noise, 1, axis=0) + where would keep the row shift on
    # the XLU; the bf16 concatenate below is the proven-lowering path and the
    # shift bytes are already halved by doing it in bf16.
    noise_bf = noise.astype(jnp.bfloat16)
    prev_bf = jnp.concatenate(
        [halo_ref[0].astype(jnp.bfloat16), noise_bf[:tm - 1, :]], axis=0)
    lhs = jnp.concatenate([prev_bf, noise_bf], axis=1)        # (tm, 2*blk) bf16
    conv = jnp.dot(lhs, w_ref[...], preferred_element_type=jnp.float32)

    # --- ASR envelope from scalars only (iota ramp, no HBM traffic) ----------
    row_i = jax.lax.broadcasted_iota(jnp.int32, (tm, blk), 0)
    col_i = jax.lax.broadcasted_iota(jnp.int32, (tm, blk), 1)
    pos_i = pl.program_id(0) * (tm * blk) + row_i * blk + col_i   # exact int32
    atk = pos_i.astype(jnp.float32) * inv_attack
    rel = (n_minus_1 - pos_i).astype(jnp.float32) * inv_release
    env01 = jnp.clip(jnp.minimum(atk, rel), 0.0, 1.0)

    # --- inner (IR reverb) blend, envelope, outer blend with dry input -------
    wet = conv * b_ir + noise * one_m_b_ir
    out_ref[...] = (wet * env01) * sus_b_out + x * one_m_b_out


def learnable_noise_reverb(x, ir, blend_ir, blend_out, attack, release,
                           sustain, noise, *, block=128, max_tile_rows=1024):
    n = x.shape[0]
    L = ir.shape[0]
    # TODO(synk): IRs longer than one block need a deeper halo / more Toeplitz
    # bands; not needed for typical ir_length here.
    assert L <= block, "ir_length must be <= block (128) for this kernel"

    # Rows padded only to a multiple of 8 (sublane granularity) — never to a
    # tile multiple, so large tiles don't inflate padding for short signals.
    num_rows = ((pl.cdiv(n, block) + 7) // 8) * 8
    n_pad = num_rows * block

    max_tile_rows = max(8, (max_tile_rows // 8) * 8)
    tile_rows = min(max_tile_rows, num_rows)
    num_tiles = pl.cdiv(num_rows, tile_rows)     # last tile may be partial

    noise_f = noise.astype(jnp.float32)
    x_f = x.astype(jnp.float32)
    if n_pad != n:
        # TODO(synk): this pad is a full HBM copy of both inputs; vanish it by
        # producing x/noise in (rows, 128) layout upstream.
        noise_f = jnp.pad(noise_f, (0, n_pad - n))
        x_f = jnp.pad(x_f, (0, n_pad - n))
    noise_mat = noise_f.reshape(num_rows, block)
    x_mat = x_f.reshape(num_rows, block)

    # One halo row per tile: last noise row of the previous tile (zeros for
    # tile 0).  rows/8 extra bytes total — negligible.
    if num_tiles > 1:
        last_rows = noise_mat[tile_rows - 1::tile_rows][:num_tiles - 1]
        halo = jnp.concatenate(
            [jnp.zeros((1, block), jnp.float32), last_rows], axis=0)
    else:
        halo = jnp.zeros((1, block), jnp.float32)
    halo = halo.reshape(num_tiles, 1, block)

    # Banded Toeplitz weight tiles from the IR taps, stacked into one resident
    # (2*block, block) bf16 weight for the fused K=256 MXU matmul:
    #   t_cur[i, t]  = ir[t - i]          (same-row contribution)
    #   t_prev[i, t] = ir[block + t - i]  (previous-row contribution)
    ir_f = ir.astype(jnp.float32)
    i_idx = jnp.arange(block)[:, None]
    t_idx = jnp.arange(block)[None, :]

    def band(lag):
        valid = (lag >= 0) & (lag < L)
        taps = jnp.take(ir_f, jnp.clip(lag, 0, L - 1))
        return jnp.where(valid, taps, 0.0)

    t_cur = band(t_idx - i_idx)
    t_prev = band(t_idx - i_idx + block)
    w = jnp.concatenate([t_prev, t_cur], axis=0).astype(jnp.bfloat16)

    b_ir = jnp.asarray(blend_ir, jnp.float32)
    b_out = jnp.asarray(blend_out, jnp.float32)
    sus = jnp.asarray(sustain, jnp.float32)
    fparams = jnp.stack([
        b_ir, 1.0 - b_ir, sus * b_out, 1.0 - b_out,
        1.0 / jnp.maximum(jnp.asarray(attack, jnp.float32), 1.0),
        1.0 / jnp.maximum(jnp.asarray(release, jnp.float32), 1.0),
    ])
    iparams = jnp.array([n - 1], jnp.int32)

    # Raise the scoped-VMEM limit only when the large tile is actually in use
    # (keeps v7x's 32 MiB / v5e's 16 MiB defaults happy for tiny signals).
    vmem_limit = 32 * 1024 * 1024 if tile_rows > 256 else None

    kernel = partial(_noise_reverb_kernel, tm=tile_rows, blk=block)
    out_mat = pl.pallas_call(
        kernel,
        out_shape=jax.ShapeDtypeStruct((num_rows, block), jnp.float32),
        grid=(num_tiles,),
        in_specs=[
            pl.BlockSpec(memory_space=pltpu.MemorySpace.SMEM),     # fparams
            pl.BlockSpec(memory_space=pltpu.MemorySpace.SMEM),     # iparams
            pl.BlockSpec((2 * block, block), lambda g: (0, 0)),    # weight
            pl.BlockSpec((1, 1, block), lambda g: (g, 0, 0)),      # halo
            pl.BlockSpec((tile_rows, block), lambda g: (g, 0)),    # noise
            pl.BlockSpec((tile_rows, block), lambda g: (g, 0)),    # x
        ],
        out_specs=pl.BlockSpec((tile_rows, block), lambda g: (g, 0)),
        compiler_params=pltpu.CompilerParams(
            dimension_semantics=("parallel",),
            vmem_limit_bytes=vmem_limit),
    )(fparams, iparams, w, halo, noise_mat, x_mat)
    return out_mat.reshape(-1)[:n]


if __name__ == "__main__":
    key = jax.random.PRNGKey(0)
    k_x, k_ir, k_noise = jax.random.split(key, 3)

    N = 2500         # 1-D signal length (exercises rows padding + partial tile)
    IR_LEN = 16      # ir_length

    x = jax.random.normal(k_x, (N,), jnp.float32)
    ir = jax.random.normal(k_ir, (IR_LEN,), jnp.float32)   # nn.Parameter(torch.randn(ir_length))
    blend_ir = jnp.float32(0.5)                            # LearnableIRReverb.blend init
    blend_out = jnp.float32(0.01)                          # LearnableNoiseReverb.blend init
    attack, release, sustain = 400.0, 800.0, 1.0           # stand-in ASR params
    # TODO(synk): torch.randn_like(x) noise is supplied explicitly (could be
    # generated in-kernel with pltpu.prng_* to save HBM traffic).
    noise = jax.random.normal(k_noise, (N,), jnp.float32)

    out = learnable_noise_reverb(x, ir, blend_ir, blend_out,
                                 attack, release, sustain, noise)
    out = jax.block_until_ready(out)

    # Pure-JAX reference of the same semantics (f32, highest-precision conv).
    # TODO(synk): LearnableASR's definition was not provided; a deterministic
    # attack/sustain/release ramp is used as a stand-in in both kernel and ref.
    conv_full = jnp.convolve(noise, ir, mode="full", precision="highest")[:N]
    rev_ref = conv_full * blend_ir + noise * (1.0 - blend_ir)
    t = jnp.arange(N, dtype=jnp.float32)
    atk_ref = jnp.clip(t * (1.0 / max(attack, 1.0)), 0.0, 1.0)
    rel_ref = jnp.clip((N - 1 - t) * (1.0 / max(release, 1.0)), 0.0, 1.0)
    env_ref = sustain * jnp.minimum(atk_ref, rel_ref)
    rev_ref = rev_ref * env_ref
    ref = rev_ref * blend_out + x * (1.0 - blend_out)

    max_err = jnp.max(jnp.abs(out - ref))
    assert jnp.allclose(out, ref, atol=2e-3, rtol=1e-3), (
        f"mismatch vs reference (max abs err {max_err})")

    print("KERNEL_OK")
</pallas_src>

<mosaic_0001>
module attributes {stable_mosaic.version = 11 : i64} {
  func.func @_noise_reverb_kernel(%arg0: i32, %arg1: memref<6xf32, #tpu.memory_space<smem>>, %arg2: memref<1xi32, #tpu.memory_space<smem>>, %arg3: memref<256x128xbf16, #tpu.memory_space<vmem>>, %arg4: memref<1x1x128xf32, #tpu.memory_space<vmem>>, %arg5: memref<24x128xf32, #tpu.memory_space<vmem>>, %arg6: memref<24x128xf32, #tpu.memory_space<vmem>>, %arg7: memref<24x128xf32, #tpu.memory_space<vmem>>) attributes {dimension_semantics = [#tpu.dimension_semantics<parallel>], iteration_bounds = array<i64: 1>, scalar_prefetch = 0 : i64, scratch_operands = 0 : i64, tpu.core_type = #tpu.core_type<tc>, window_params = [{transform_indices = @transform_0, window_bounds = array<i64: 6>}, {transform_indices = @transform_1, window_bounds = array<i64: 1>}, {pipeline_mode = #tpu.pipeline_mode<synchronous>, transform_indices = @transform_2, window_bounds = array<i64: 256, 128>}, {transform_indices = @transform_3, window_bounds = array<i64: 1, 1, 128>}, {transform_indices = @transform_4, window_bounds = array<i64: 24, 128>}, {transform_indices = @transform_5, window_bounds = array<i64: 24, 128>}, {transform_indices = @transform_6, window_bounds = array<i64: 24, 128>}]} {
    %c0 = arith.constant 0 : index
    %c0_0 = arith.constant 0 : index
    %0 = vector.load %arg5[%c0, %c0_0] : memref<24x128xf32, #tpu.memory_space<vmem>>, vector<24x128xf32>
    %c0_1 = arith.constant 0 : index
    %c0_2 = arith.constant 0 : index
    %1 = vector.load %arg6[%c0_1, %c0_2] : memref<24x128xf32, #tpu.memory_space<vmem>>, vector<24x128xf32>
    %c0_3 = arith.constant 0 : index
    %2 = memref.load %arg1[%c0_3] : memref<6xf32, #tpu.memory_space<smem>>
    %c1 = arith.constant 1 : index
    %3 = memref.load %arg1[%c1] : memref<6xf32, #tpu.memory_space<smem>>
    %c2 = arith.constant 2 : index
    %4 = memref.load %arg1[%c2] : memref<6xf32, #tpu.memory_space<smem>>
    %c3 = arith.constant 3 : index
    %5 = memref.load %arg1[%c3] : memref<6xf32, #tpu.memory_space<smem>>
    %c4 = arith.constant 4 : index
    %6 = memref.load %arg1[%c4] : memref<6xf32, #tpu.memory_space<smem>>
    %c5 = arith.constant 5 : index
    %7 = memref.load %arg1[%c5] : memref<6xf32, #tpu.memory_space<smem>>
    %c0_4 = arith.constant 0 : index
    %8 = memref.load %arg2[%c0_4] : memref<1xi32, #tpu.memory_space<smem>>
    %9 = arith.truncf %0 : vector<24x128xf32> to vector<24x128xbf16>
    %c0_5 = arith.constant 0 : index
    %c0_6 = arith.constant 0 : index
    %c0_7 = arith.constant 0 : index
    %10 = vector.load %arg4[%c0_5, %c0_6, %c0_7] : memref<1x1x128xf32, #tpu.memory_space<vmem>>, vector<1x1x128xf32>
    %11 = vector.shape_cast %10 : vector<1x1x128xf32> to vector<1x128xf32>
    %12 = arith.truncf %11 : vector<1x128xf32> to vector<1x128xbf16>
    %13 = vector.extract_strided_slice %9 {offsets = [0, 0], sizes = [23, 128], strides = [1, 1]} : vector<24x128xbf16> to vector<23x128xbf16>
    %14 = tpu.concatenate %12, %13 in 0 : vector<1x128xbf16>, vector<23x128xbf16> -> vector<24x128xbf16>
    %15 = tpu.concatenate %14, %9 in 1 : vector<24x128xbf16>, vector<24x128xbf16> -> vector<24x256xbf16>
    %c0_8 = arith.constant 0 : index
    %c0_9 = arith.constant 0 : index
    %16 = vector.load %arg3[%c0_8, %c0_9] : memref<256x128xbf16, #tpu.memory_space<vmem>>, vector<256x128xbf16>
    %cst = arith.constant dense<0.000000e+00> : vector<24x128xf32>
    %17 = tpu.matmul %15, %16, %cst {dimension_numbers = #tpu.dot_dimension_numbers<[1], [0], [0], [1], [0, 0, 1, 1], [], []>} : vector<24x256xbf16>, vector<256x128xbf16>, vector<24x128xf32> -> vector<24x128xf32>
    %18 = tpu.iota {dimensions = array<i32: 0>} : vector<24x128xi32>
    %19 = tpu.iota {dimensions = array<i32: 1>} : vector<24x128xi32>
    %c3072_i32 = arith.constant 3072 : i32
    %20 = arith.muli %arg0, %c3072_i32 : i32
    %c128_i32 = arith.constant 128 : i32
    %21 = vector.broadcast %c128_i32 : i32 to vector<24x128xi32>
    %22 = arith.muli %18, %21 : vector<24x128xi32>
    %23 = vector.broadcast %20 : i32 to vector<24x128xi32>
    %24 = arith.addi %23, %22 : vector<24x128xi32>
    %25 = arith.addi %24, %19 : vector<24x128xi32>
    %26 = arith.sitofp %25 : vector<24x128xi32> to vector<24x128xf32>
    %27 = vector.broadcast %6 : f32 to vector<24x128xf32>
    %28 = arith.mulf %26, %27 : vector<24x128xf32>
    %29 = vector.broadcast %8 : i32 to vector<24x128xi32>
    %30 = arith.subi %29, %25 : vector<24x128xi32>
    %31 = arith.sitofp %30 : vector<24x128xi32> to vector<24x128xf32>
    %32 = vector.broadcast %7 : f32 to vector<24x128xf32>
    %33 = arith.mulf %31, %32 : vector<24x128xf32>
    %34 = arith.minimumf %28, %33 : vector<24x128xf32>
    %cst_10 = arith.constant 0.000000e+00 : f32
    %cst_11 = arith.constant 1.000000e+00 : f32
    %35 = vector.broadcast %cst_10 : f32 to vector<24x128xf32>
    %36 = arith.maximumf %35, %34 : vector<24x128xf32>
    %37 = vector.broadcast %cst_11 : f32 to vector<24x128xf32>
    %38 = arith.minimumf %37, %36 : vector<24x128xf32>
    %39 = vector.broadcast %2 : f32 to vector<24x128xf32>
    %40 = arith.mulf %17, %39 : vector<24x128xf32>
    %41 = vector.broadcast %3 : f32 to vector<24x128xf32>
    %42 = arith.mulf %0, %41 : vector<24x128xf32>
    %43 = arith.addf %40, %42 : vector<24x128xf32>
    %44 = arith.mulf %43, %38 : vector<24x128xf32>
    %45 = vector.broadcast %4 : f32 to vector<24x128xf32>
    %46 = arith.mulf %44, %45 : vector<24x128xf32>
    %47 = vector.broadcast %5 : f32 to vector<24x128xf32>
    %48 = arith.mulf %1, %47 : vector<24x128xf32>
    %49 = arith.addf %46, %48 : vector<24x128xf32>
    %c0_12 = arith.constant 0 : index
    %c0_13 = arith.constant 0 : index
    %50 = vector.load %arg7[%c0_12, %c0_13] : memref<24x128xf32, #tpu.memory_space<vmem>>, vector<24x128xf32>
    tpu.vector_store %arg7[%c0_12, %c0_13], %49 {strides = array<i32>} : memref<24x128xf32, #tpu.memory_space<vmem>>, vector<24x128xf32>,
    return
  }
  func.func @transform_0(%arg0: i32) -> i32 {
    %c0_i32 = arith.constant 0 : i32
    %c0_i32_0 = arith.constant 0 : i32
    return %c0_i32 : i32
  }
  func.func @transform_1(%arg0: i32) -> i32 {
    %c0_i32 = arith.constant 0 : i32
    %c0_i32_0 = arith.constant 0 : i32
    return %c0_i32 : i32
  }
  func.func @transform_2(%arg0: i32) -> (i32, i32) {
    %c0_i32 = arith.constant 0 : i32
    %c0_i32_0 = arith.constant 0 : i32
    %c0_i32_1 = arith.constant 0 : i32
    return %c0_i32, %c0_i32_0 : i32, i32
  }
  func.func @transform_3(%arg0: i32) -> (i32, i32, i32) {
    %c0_i32 = arith.constant 0 : i32
    %c0_i32_0 = arith.constant 0 : i32
    %c0_i32_1 = arith.constant 0 : i32
    return %arg0, %c0_i32, %c0_i32_0 : i32, i32, i32
  }
  func.func @transform_4(%arg0: i32) -> (i32, i32) {
    %c0_i32 = arith.constant 0 : i32
    %c0_i32_0 = arith.constant 0 : i32
    return %arg0, %c0_i32 : i32, i32
  }
  func.func @transform_5(%arg0: i32) -> (i32, i32) {
    %c0_i32 = arith.constant 0 : i32
    %c0_i32_0 = arith.constant 0 : i32
    return %arg0, %c0_i32 : i32, i32
  }
  func.func @transform_6(%arg0: i32) -> (i32, i32) {
    %c0_i32 = arith.constant 0 : i32
    %c0_i32_0 = arith.constant 0 : i32
    return %arg0, %c0_i32 : i32, i32
  }
}

</mosaic_0001>

<bundles_post_ra>
// kernel: tpu_custom_call.1
= control target key start
LH: loop header
LB: loop body
LE: loop exit
PB: predicated region body
PF: predicated region fallthrough
CT: control target
= control target key end

     0   :  { %12 = vsyncpa [#allocation6], 0  ;;  %s706_s0 = inlined_call_operand.vmem [shape: f32[6], index: 0, kind: input, shape index: {}]   ;;  %s707_s1 = inlined_call_operand.<no memory space> [shape: s32[1], index: 1, kind: input, shape index: {}]   ;;  %s708_s2 = inlined_call_operand.hbm [shape: bf16[256,128], index: 2, kind: input, shape index: {}]   ;;  %s709_s3 = inlined_call_operand.vmem [shape: f32[1,1,128], index: 3, kind: input, shape index: {}]   ;;  %s710_s4 = inlined_call_operand.hbm [shape: f32[24,128], index: 4, kind: input, shape index: {}]   ;;  %s711_s5 = inlined_call_operand.hbm [shape: f32[24,128], index: 5, kind: input, shape index: {}]   ;;  %s712_s6 = inlined_call_operand.hbm [shape: f32[24,128], index: 6, kind: output, shape index: {}]  }
   0x1   :  { %13 = vsyncpa [#allocation4], 0 }
   0x2   :  { %14 = vsyncpa [#allocation9], 0 }
   0x3   :  { %15 = vsyncpa [#allocation5], 0  ;;  %s583_s21 = smov [#allocation8]   ;;  %s22_s25 = sshll.u32 %s706_s0, 4  ;;  %s23_s25 = int_to_ptr.vmem [resolvable:$true] %s22_s25 }
   0x4   :  { %s47_s22 = sshll.u32 %s583_s21, 4  ;;  %s475_s28 = scalar_lea.hbm %s710_s4, 384  ;;  %s48_s22 = int_to_ptr.vmem [resolvable:$true] %s47_s22 }
   0x5   :  { %p476_p0 = scmp.ne.s32.totalorder %s710_s4, %s475_s28  ;;  %p479_p1 = scmp.lt.u32.totalorder %s475_s28, %s710_s4 }
   0x7   :  { %p481_p2 = pnand %p479_p1, %p476_p0 }
   0x9   :  { %484 = shalt.err (!%p481_p2)
}
   0xa   :  { %s485_s9 = scalar_lea.vmem %s48_s22, 384  ;;  %p490_p4 = scmp.lt.s32.totalorder %s48_s22, %s48_s22 }
   0xb   :  { %p486_p3 = scmp.ne.s32.totalorder %s48_s22, %s485_s9  ;;  %p491_p5 = scmp.lt.s32.totalorder %s485_s9, %s485_s9 }
   0xd   :  { %p492_p6 = por %p491_p5, %p490_p4 }
   0xf   :  { %p493_p7 = pnand %p492_p6, %p486_p3 }
  0x11   :  { %496 = shalt.err (!%p493_p7)
}
  0x12   :  { %s584_s0 = smov 128   ;;  %s585_s10 = smov 8  }
  0x13   :  { %53 = dma.hbm_to_vmem [thread:$0]  %s710_s4, 384, %s48_s22, [#allocation9], %s584_s0, %s584_s0, %s585_s10  }
  0x14   :  { %s497_s13 = scalar_lea.vmem %s23_s25, 16  ;;  %p502_p9 = scmp.lt.s32.totalorder %s23_s25, %s23_s25 }
  0x15   :  { %p498_p8 = scmp.ne.s32.totalorder %s23_s25, %s497_s13  ;;  %p503_p10 = scmp.lt.s32.totalorder %s497_s13, %s497_s13 }
  0x17   :  { %p504_p11 = por %p503_p10, %p502_p9 }
  0x19   :  { %p505_p12 = pnand %p504_p11, %p498_p8 }
  0x1b   :  { %508 = shalt.err (!%p505_p12)
}
  0x1c   :  { %s586_s14 = smov [#allocation3]   ;;  %s587_s15 = smov [#allocation7]  }
  0x1d   :  { %25 = dma.vmem_to_smem %s23_s25, 16, %s586_s14, [#allocation6]  }
  0x1e   :  { %s33_s16 = sshll.u32 %s587_s15, 4  ;;  %s509_s19 = scalar_lea.hbm %s708_s2, 2048  ;;  %s34_s16 = int_to_ptr.vmem [resolvable:$true] %s33_s16 }
  0x1f   :  { %p510_p13 = scmp.ne.s32.totalorder %s708_s2, %s509_s19  ;;  %p513_p0 = scmp.lt.u32.totalorder %s509_s19, %s708_s2 }
  0x21   :  { %p515_p1 = pnand %p513_p0, %p510_p13 }
  0x23   :  { %518 = shalt.err (!%p515_p1)
}
  0x24   :  { %s519_s23 = scalar_lea.vmem %s34_s16, 2048  ;;  %p524_p3 = scmp.lt.s32.totalorder %s34_s16, %s34_s16 }
  0x25   :  { %p520_p2 = scmp.ne.s32.totalorder %s34_s16, %s519_s23  ;;  %p525_p4 = scmp.lt.s32.totalorder %s519_s23, %s519_s23 }
  0x27   :  { %p526_p5 = por %p525_p4, %p524_p3 }
  0x29   :  { %p527_p6 = pnand %p526_p5, %p520_p2 }
  0x2b   :  { %530 = shalt.err (!%p527_p6)
}
  0x2c   :  { %s588_s24 = smov 64   ;;  %s589_s25 = smov 4  }
  0x2d   :  { %39 = dma.hbm_to_vmem [thread:$0]  %s708_s2, 2048, %s34_s16, [#allocation4], %s588_s24, %s588_s24, %s589_s25  }
  0x2e   :  { %s590_s28 = smov [#allocation10]   ;;  %s531_s8 = scalar_lea.hbm %s711_s5, 384 }
  0x2f   :  { %s59_s29 = sshll.u32 %s590_s28, 4  ;;  %p532_p7 = scmp.ne.s32.totalorder %s711_s5, %s531_s8  ;;  %s60_s29 = int_to_ptr.vmem [resolvable:$true] %s59_s29 }
  0x30   :  { %p535_p8 = scmp.lt.u32.totalorder %s531_s8, %s711_s5 }
  0x32   :  { %p537_p9 = pnand %p535_p8, %p532_p7 }
  0x34   :  { %540 = shalt.err (!%p537_p9)
}
  0x35   :  { %s541_s14 = scalar_lea.vmem %s60_s29, 384  ;;  %p546_p11 = scmp.lt.s32.totalorder %s60_s29, %s60_s29 }
  0x36   :  { %p542_p10 = scmp.ne.s32.totalorder %s60_s29, %s541_s14  ;;  %p547_p12 = scmp.lt.s32.totalorder %s541_s14, %s541_s14 }
  0x38   :  { %p548_p13 = por %p547_p12, %p546_p11 }
  0x3a   :  { %p549_p0 = pnand %p548_p13, %p542_p10 }
  0x3c   :  { %552 = shalt.err (!%p549_p0)
}
  0x3d   :  { %65 = dma.hbm_to_vmem [thread:$0]  %s711_s5, 384, %s60_s29, [#allocation9], %s584_s0, %s584_s0, %s585_s10  }
  0x3e   :  { %575 = dma.done.wait [#allocation6], 16  }
  0x3f   :  { %576 = vsyncadd [#allocation6], 4294967280 }
  0x40   :  { %577 = dma.done.wait [#allocation4], 2048  }
  0x41   :  { %578 = vsyncadd [#allocation4], 4294965248 }
  0x42   :  { %579 = dma.done.wait [#allocation9], 768  }
  0x43   :  { %580 = vsyncadd [#allocation9], 4294966528 }
  0x44   :  { %78 = sfence }
  0x45   :  { %v459_v0 = vld [vmem:[#allocation7 + $0x40] sm:$0xff]   ;;  %v461_v2 = vld [vmem:[#allocation7 + $0x48] sm:$0xff]   ;;  %v463_v4 = vld [vmem:[#allocation7 + $0x50] sm:$0xff]   ;;  %vm97_vm0 = vsmask.f32 256  ;;  %vm115_vm1 = vcmask 1040384   ;;  %v294_v33 = vlaneseq  ;;  %v318_v43 = vstv %s707_s1 }
  0x46   :  { %v460_v1 = vld [vmem:[#allocation7] sm:$0xff]   ;;  %406 = vmatprep.subr.bf16.mxu0 %v459_v0  ;;  %434 = vmatprep.subr.bf16.mxu1 %v459_v0  ;;  %v462_v3 = vld [vmem:[#allocation7 + $0x8] sm:$0xff]   ;;  %v464_v5 = vld [vmem:[#allocation7 + $0x10] sm:$0xff]   ;;  %s389_s17 = sld [smem:[#allocation3 + $0x5]]  ;;  %s385_s20 = sld [smem:[#allocation3 + $0x1]] }
  0x47   :  { %407 = vmatpush3.bf16.msra.mxu0 %v460_v1  ;;  %442 = vmatpush3.bf16.msra.mxu1 %v460_v1  ;;  %v465_v6 = vld [vmem:[#allocation7 + $0x58] sm:$0xff]   ;;  %v467_v8 = vld [vmem:[#allocation7 + $0x60] sm:$0xff]   ;;  %v469_v10 = vld [vmem:[#allocation7 + $0x68] sm:$0xff]   ;;  %v295_v34 = vshrl.u32 %v294_v33, 7  ;;  %v299_v37 = vand.u32 127, %v294_v33  ;;  %s86_s21 = sld [smem:[#allocation3]] }
  0x48   :  { %408 = vmatprep.subr.bf16.mxu0 %v461_v2  ;;  %435 = vmatprep.subr.bf16.mxu1 %v461_v2  ;;  %v466_v7 = vld [vmem:[#allocation7 + $0x18] sm:$0xff]   ;;  %v468_v9 = vld [vmem:[#allocation7 + $0x20] sm:$0xff]   ;;  %v674_v12 = vld [vmem:[#allocation8 + $0x8] sm:$0xff]  ;;  %s387_s1 = sld [smem:[#allocation3 + $0x3]]  ;;  %s386_s4 = sld [smem:[#allocation3 + $0x2]] }
  0x49   :  { %v672_v11 = vld [vmem:[#allocation8] sm:$0xff]  ;;  %v676_v13 = vld [vmem:[#allocation8 + $0x10] sm:$0xff]  ;;  %v470_v16 = vld [vmem:[#allocation7 + $0x28] sm:$0xff]   ;;  %v297_v35 = vadd.s32 16, %v295_v34  ;;  %v296_v36 = vadd.s32 8, %v295_v34  ;;  %v301_v38 = vmul.u32 128, %v295_v34 }
  0x4a   :  { %v93_v14 = vpack.c.bf16 %v674_v12, %v672_v11  ;;  %v94_v15 = vpack.c.bf16 %v676_v13, %v676_v13  ;;  %v471_v19 = vld [vmem:[#allocation7 + $0x70] sm:$0xff]   ;;  %v473_v25 = vld [vmem:[#allocation7 + $0x78] sm:$0xff]   ;;  %v95_v26 = vld [vmem:[%s709_s3] sm:$0x1]  ;;  %s388_s3 = sld [smem:[#allocation3 + $0x4]]  ;;  %s591_s22 = smov [#allocation11]  }
  0x4b   :  { %409 = vmatpush3.bf16.msra.mxu0 %v462_v3  ;;  %443 = vmatpush3.bf16.msra.mxu1 %v462_v3  ;;  %v472_v20 = vld [vmem:[#allocation7 + $0x30] sm:$0xff]   ;;  %v474_v27 = vld [vmem:[#allocation7 + $0x38] sm:$0xff]   ;;  %v96_v28 = vpack.c.bf16 %v95_v26, %v95_v26  ;;  %vm116_vm2 = vmand %vm115_vm1, %vm97_vm0  ;;  %v303_v39 = vmul.u32 128, %v297_v35  ;;  %v302_v40 = vmul.u32 128, %v296_v36  ;;  %v308_v41 = vadd.s32 %v301_v38, %v299_v37  ;;  %s371_s23 = sshll.u32 %s591_s22, 4  ;;  %s372_s23 = int_to_ptr.vmem [resolvable:$true] %s371_s23 }
  0x4c   :  { %410 = vmatprep.subr.bf16.mxu0 %v463_v4  ;;  %436 = vmatprep.subr.bf16.mxu1 %v463_v4  ;;  %v99_v17 = vshrl.u32 %v93_v14, 16  ;;  %v106_v18 = vshrl.u32 %v94_v15, 16  ;;  %v102_v22 = vshll.u32 %v93_v14, 16  ;;  %v109_v24 = vshll.u32 %v94_v15, 16  ;;  %s553_s24 = scalar_lea.vmem %s372_s23, 384  ;;  %p558_p2 = scmp.lt.s32.totalorder %s372_s23, %s372_s23 }
  0x4d   :  { %278 = vmatprep.mubr.bf16.mxu0 %v93_v14  ;;  %286 = vmatprep.mubr.bf16.mxu1 %v94_v15  ;;  %v310_v42 = vadd.s32 %v303_v39, %v299_v37  ;;  %v309_v44 = vadd.s32 %v302_v40, %v299_v37  ;;  %v319_v45 = vsub.s32 %v318_v43, %v308_v41  ;;  %v311_v48 = vcvt.s32.f32 %v308_v41  ;;  %p554_p1 = scmp.ne.s32.totalorder %s372_s23, %s553_s24  ;;  %p559_p3 = scmp.lt.s32.totalorder %s553_s24, %s553_s24 }
  0x4e   :  { %v101_v21 = vrot.slane %v99_v17, 7  ;;  %v108_v23 = vrot.slane %v106_v18, 7  ;;  %v325_v53 = vstv %s389_s17  ;;  %v342_v0 = vstv %s385_s20 }
  0x4f   :  { %411 = vmatpush3.bf16.msra.mxu0 %v464_v5  ;;  %444 = vmatpush3.bf16.msra.mxu1 %v464_v5  ;;  %v321_v46 = vsub.s32 %v318_v43, %v310_v42  ;;  %v320_v47 = vsub.s32 %v318_v43, %v309_v44  ;;  %v322_v49 = vcvt.s32.f32 %v319_v45  ;;  %v313_v50 = vcvt.s32.f32 %v310_v42  ;;  %p560_p4 = por %p559_p3, %p558_p2 }
  0x50   :  { %412 = vmatprep.subr.bf16.mxu0 %v465_v6  ;;  %437 = vmatprep.subr.bf16.mxu1 %v465_v6  ;;  %v104_v29 = vor.u32 %v102_v22, %v101_v21  ;;  %v111_v30 = vor.u32 %v109_v24, %v108_v23  ;;  %v314_v52 = vstv %s388_s3  ;;  %v312_v54 = vcvt.s32.f32 %v309_v44 }
  0x51   :  { %v324_v51 = vcvt.s32.f32 %v321_v46  ;;  %v323_v55 = vcvt.s32.f32 %v320_v47  ;;  %v315_v56 = vmul.f32 %v314_v52, %v311_v48  ;;  %v326_v57 = vmul.f32 %v325_v53, %v322_v49  ;;  %p561_p5 = pnand %p560_p4, %p554_p1 }
  0x52   :  { %v117_v31 = vsel %vm116_vm2, %v96_v28, %v104_v29  ;;  %v112_v32 = vsel %vm97_vm0, %v101_v21, %v111_v30  ;;  %v317_v58 = vmul.f32 %v314_v52, %v313_v50  ;;  %v316_v60 = vmul.f32 %v314_v52, %v312_v54  ;;  %v85_v28 = vld [vmem:[#allocation10 + $0x10] sm:$0xff] }
  0x53   :  { %413 = vmatpush3.bf16.msra.mxu0 %v466_v7  ;;  %445 = vmatpush3.bf16.msra.mxu1 %v466_v7  ;;  %v328_v59 = vmul.f32 %v325_v53, %v324_v51  ;;  %v327_v61 = vmul.f32 %v325_v53, %v323_v55  ;;  %v329_v62 = vmin.f32 %v315_v56, %v326_v57  ;;  %v352_v33 = vstv %s386_s4 }
  0x54   :  { %414 = vmatprep.subr.bf16.mxu0 %v467_v8  ;;  %438 = vmatprep.subr.bf16.mxu1 %v467_v8  ;;  %v343_v6 = vmul.f32 %v342_v0, %v672_v11  ;;  %v338_v8 = vstv %s86_s21  ;;  %v83_v11 = vld [vmem:[#allocation10] sm:$0xff] }
  0x55   :  { %v331_v63 = vmin.f32 %v317_v58, %v328_v59  ;;  %v330_v1 = vmin.f32 %v316_v60, %v327_v61  ;;  %v332_v2 = vmax.f32 %v329_v62, 0.0 }
  0x57   :  { %415 = vmatpush3.bf16.msra.mxu0 %v468_v9  ;;  %446 = vmatpush3.bf16.msra.mxu1 %v468_v9  ;;  %v334_v3 = vmax.f32 %v331_v63, 0.0  ;;  %v333_v18 = vmax.f32 %v330_v1, 0.0 }
  0x58   :  { %416 = vmatprep.subr.bf16.mxu0 %v469_v10  ;;  %439 = vmatprep.subr.bf16.mxu1 %v469_v10  ;;  %v345_v10 = vmul.f32 %v342_v0, %v676_v13 }
  0x59   :  { %v337_v21 = vmin.f32 %v334_v3, 1.0  ;;  %v336_v13 = vmin.f32 %v333_v18, 1.0 }
  0x5b   :  { %417 = vmatpush3.bf16.msra.mxu0 %v470_v16  ;;  %447 = vmatpush3.bf16.msra.mxu1 %v470_v16 }
  0x5c   :  { %418 = vmatprep.subr.bf16.mxu0 %v471_v19  ;;  %440 = vmatprep.subr.bf16.mxu1 %v471_v19  ;;  %v344_v19 = vmul.f32 %v342_v0, %v674_v12 }
  0x5f   :  { %419 = vmatpush3.bf16.msra.mxu0 %v472_v20  ;;  %448 = vmatpush3.bf16.msra.mxu1 %v472_v20  ;;  %v335_v20 = vmin.f32 %v332_v2, 1.0 }
  0x60   :  { %420 = vmatprep.subr.bf16.mxu0 %v473_v25  ;;  %441 = vmatprep.subr.bf16.mxu1 %v473_v25 }
  0x63   :  { %421 = vmatpush3.bf16.msra.mxu0 %v474_v27  ;;  %449 = vmatpush3.bf16.msra.mxu1 %v474_v27  ;;  %v356_v27 = vstv %s387_s1 }
  0x64   :  { %v357_v34 = vmul.f32 %v356_v27, %v83_v11  ;;  %v359_v37 = vmul.f32 %v356_v27, %v85_v28 }
  0x66   :  { %279 = vmatmul.mubr.bf16.vlgmr.msra.gmra.mrb[0].mxu0 %v117_v31  ;;  %287 = vmatmul.mubr.bf16.vlgmr.msra.gmra.mrb[0].mxu1 %v112_v32  ;;  %v84_v32 = vld [vmem:[#allocation10 + $0x8] sm:$0xff] }
  0x67   :  { %v358_v41 = vmul.f32 %v356_v27, %v84_v32 }
 0x139   :  { %v422_v4 = vpop.f32.mrb[0].mxu0  ;;  %v428_v5 = vpop.f32.mrb[0].mxu1 }
 0x13a   :  { %v423_v7 = vpop.f32.mrb[1].mxu0  ;;  %v429_v9 = vpop.f32.mrb[1].mxu1 }
 0x13b   :  { %v424_v14 = vadd.f32 %v423_v7, %v422_v4  ;;  %v430_v15 = vadd.f32 %v429_v9, %v428_v5  ;;  %v425_v16 = vpop.f32.mrb[2].mxu0  ;;  %v431_v17 = vpop.f32.mrb[2].mxu1 }
 0x13c   :  { %v426_v22 = vpop.f32.mrb[3].mxu0  ;;  %v432_v23 = vpop.f32.mrb[3].mxu1 }
 0x13d   :  { %v339_v24 = vmul.f32 %v424_v14, %v338_v8  ;;  %v341_v25 = vmul.f32 %v430_v15, %v338_v8  ;;  %v427_v26 = vadd.f32 %v426_v22, %v425_v16 }
 0x13f   :  { %v346_v29 = vadd.f32 %v343_v6, %v339_v24  ;;  %v348_v30 = vadd.f32 %v345_v10, %v341_v25  ;;  %v340_v31 = vmul.f32 %v427_v26, %v338_v8 }
 0x141   :  { %v349_v35 = vmul.f32 %v346_v29, %v335_v20  ;;  %v351_v36 = vmul.f32 %v348_v30, %v337_v21  ;;  %v347_v12 = vadd.f32 %v344_v19, %v340_v31 }
 0x143   :  { %v350_v38 = vmul.f32 %v347_v12, %v336_v13  ;;  %v353_v39 = vmul.f32 %v352_v33, %v349_v35  ;;  %v355_v40 = vmul.f32 %v352_v33, %v351_v36 }
 0x145   :  { %v354_v42 = vmul.f32 %v352_v33, %v350_v38  ;;  %v360_v43 = vadd.f32 %v357_v34, %v353_v39  ;;  %v362_v44 = vadd.f32 %v359_v37, %v355_v40 }
 0x147   :  { %v361_v45 = vadd.f32 %v358_v41, %v354_v42  ;;  %363 = vst [vmem:[#allocation11] sm:$0xff] %v360_v43  ;;  %365 = vst [vmem:[#allocation11 + $0x10] sm:$0xff] %v362_v44 }
 0x149   :  { %364 = vst [vmem:[#allocation11 + $0x8] sm:$0xff] %v361_v45 }
 0x14a   :  { %564 = shalt.err (!%p561_p5)
}
 0x14b   :  { %s565_s27 = scalar_lea.hbm %s712_s6, 384 }
 0x14c   :  { %p566_p6 = scmp.ne.s32.totalorder %s712_s6, %s565_s27  ;;  %p569_p7 = scmp.lt.u32.totalorder %s565_s27, %s712_s6 }
 0x14e   :  { %p571_p8 = pnand %p569_p7, %p566_p6 }
 0x150   :  { %574 = shalt.err (!%p571_p8)
}
 0x151   :  { %377 = dma.vmem_to_hbm [thread:$0]  %s372_s23, 384, %s712_s6, [#allocation5], %s584_s0, %s584_s0, %s585_s10  }
 0x152   :  { %581 = dma.done.wait [#allocation5], 384  }
 0x153   :  { %582 = vsyncadd [#allocation5], 4294966912 }
 0x154   :  { %381 = vsyncpa [#allocation4], 1 }
 0x155   :  { %382 = vsyncpa [#allocation9], 1 }
 0x156   :  { %383 = vsyncpa [#allocation5], 1 }
 0x157   :  { %384 = vsyncpa [#allocation6], 1 }

</bundles_post_ra>
